<compile_context>
chip_gen: v7x
topology: tpu7x:2x2x1
jax: 0.10.0
libtpu: 0.0.40
codegen_flags: <defaults>
</compile_context>

<pallas_src>
import math
import functools

import jax
import jax.numpy as jnp
from jax.experimental import pallas as pl
from jax.experimental.pallas import tpu as pltpu


def make_sinusoidal_pe(d_model: int, max_len: int = 500, dtype=jnp.float32):
    """Deterministic construction of the `pe` buffer (same math as torch __init__)."""
    position = jnp.arange(max_len, dtype=jnp.float32)[:, None]                    # (L, 1)
    div_term = jnp.exp(jnp.arange(0, d_model, 2, dtype=jnp.float32)
                       * (-math.log(10000.0) / d_model))                          # (D/2,)
    angles = position * div_term                                                  # (L, D/2)
    pe = jnp.zeros((max_len, d_model), dtype=dtype)
    pe = pe.at[:, 0::2].set(jnp.sin(angles).astype(dtype))
    pe = pe.at[:, 1::2].set(jnp.cos(angles).astype(dtype))
    return pe                                                                     # (L, D)


def _choose_tile_rows(n_rows: int, row_bytes: int, target_bytes: int = 2 << 20) -> int:
    """Rows per tile along the leading (tiled) axis.

    Big enough (>= ~512 effective sublane rows for real model widths) to hit the
    HBM roofline, small enough that 2x(x) + 2x(out) + 2x(mask) tiles stay well
    inside the default scoped VMEM limit on all of v5e / v6e / v7x.
    """
    t = max(1, target_bytes // max(row_bytes, 1))
    if t >= n_rows:
        return n_rows
    return min(n_rows, max(8, (t // 8) * 8))


def _make_pe_kernel(batch_first: bool, apply_dropout: bool):
    """Kernel body: elementwise add of positional encoding + (optional) dropout mask."""

    if batch_first:
        def add_pe(x, pe):            # x: (tB, S, D), pe: (S, D)
            return x + pe[None, :, :]
    else:
        def add_pe(x, pe):            # x: (tS, B, D), pe: (tS, D)
            return x + pe[:, None, :]

    if apply_dropout:
        def kernel(x_ref, pe_ref, mask_ref, o_ref):
            y = add_pe(x_ref[...], pe_ref[...])
            # mask is already {0, 1/(1-p)} in x.dtype -> single VPU multiply.
            o_ref[...] = (y * mask_ref[...]).astype(o_ref.dtype)
    else:
        def kernel(x_ref, pe_ref, o_ref):
            y = add_pe(x_ref[...], pe_ref[...])
            o_ref[...] = y.astype(o_ref.dtype)

    return kernel


@functools.partial(jax.jit,
                   static_argnames=("p", "training", "batch_first", "tile_rows"))
def positional_encoding_forward(x, pe, key=None, *, p: float = 0.1,
                                training: bool = False, batch_first: bool = False,
                                tile_rows=None):
    """Pallas implementation of PositionalEncoding.forward.

    x  : (S, B, D) if batch_first=False, else (B, S, D)
    pe : (max_len, D) sinusoidal table
    key: jax PRNG key, required only when training=True and p > 0
    """
    if x.ndim != 3:
        raise ValueError("x must be rank-3 (seq/batch, batch/seq, d_model)")

    seq_len = x.shape[1] if batch_first else x.shape[0]
    d_model = x.shape[2]
    if pe.shape[0] < seq_len or pe.shape[1] != d_model:
        raise ValueError("pe table too small / d_model mismatch")

    # Glue slice + dtype cast in plain JAX (keeps kernel add in x.dtype).
    pe_slice = pe[:seq_len].astype(x.dtype)                 # (S, D)

    # ---- tiling over the leading axis ------------------------------------
    lead = x.shape[0]
    row_bytes = x.shape[1] * x.shape[2] * x.dtype.itemsize
    if tile_rows is None:
        tile_rows = _choose_tile_rows(lead, row_bytes)
    tile_rows = int(min(tile_rows, lead))
    if (not batch_first) and tile_rows < seq_len and tile_rows % 8 != 0:
        raise ValueError("tile_rows must be a multiple of 8 (or the full seq_len) "
                         "so the pe block satisfies the (8,128) tiling constraint")

    grid = (pl.cdiv(lead, tile_rows),)
    x_block = (tile_rows,) + x.shape[1:]

    # NOTE: for real jukebox widths d_model is a multiple of 128 -> lane-dense
    # unmasked stores. The tiny demo width (32) necessarily uses masked stores.
    x_spec = pl.BlockSpec(x_block, lambda i: (i, 0, 0))
    out_spec = pl.BlockSpec(x_block, lambda i: (i, 0, 0))
    if batch_first:
        pe_spec = pl.BlockSpec(pe_slice.shape, lambda i: (0, 0))          # full pe each tile
    else:
        pe_spec = pl.BlockSpec((tile_rows, d_model), lambda i: (i, 0))    # pe tiles with seq

    apply_dropout = bool(training) and p > 0.0
    kernel = _make_pe_kernel(batch_first, apply_dropout)

    in_specs = [x_spec, pe_spec]
    args = [x, pe_slice]
    if apply_dropout:
        if key is None:
            raise ValueError("a PRNG key is required when training=True and p > 0")
        keep = jax.random.bernoulli(key, 1.0 - p, shape=x.shape)          # keep prob = 1-p
        mask = jnp.where(keep,
                         jnp.asarray(1.0 / (1.0 - p), dtype=x.dtype),
                         jnp.asarray(0.0, dtype=x.dtype))
        in_specs.append(pl.BlockSpec(x_block, lambda i: (i, 0, 0)))
        args.append(mask)

    return pl.pallas_call(
        kernel,
        out_shape=jax.ShapeDtypeStruct(x.shape, x.dtype),
        grid=grid,
        in_specs=in_specs,
        out_specs=out_spec,
        compiler_params=pltpu.CompilerParams(
            dimension_semantics=("parallel",)),   # v7x: shard grid across both TCs
    )(*args)


if __name__ == "__main__":
    d_model = 32
    seq_len = 8
    batch = 2
    max_len = 500
    p = 0.1

    root = jax.random.PRNGKey(0)
    kx, kx2 = jax.random.split(root)

    pe = make_sinusoidal_pe(d_model, max_len=max_len)

    # ---- eval mode, batch_first=False: (S, B, D) --------------------------
    x = jax.random.normal(kx, (seq_len, batch, d_model), dtype=jnp.float32)
    out = positional_encoding_forward(x, pe, p=p, training=False, batch_first=False)
    out = jax.block_until_ready(out)
    ref = x + pe[:seq_len][:, None, :]
    assert out.shape == x.shape and out.dtype == x.dtype
    assert jnp.allclose(out, ref, atol=1e-6, rtol=1e-6), "eval mismatch vs reference"

    # ---- multi-tile grid path (seq tiled in blocks of 8) -------------------
    seq_len2 = 24
    x2 = jax.random.normal(kx2, (seq_len2, batch, d_model), dtype=jnp.float32)
    out2 = positional_encoding_forward(x2, pe, p=p, training=False,
                                       batch_first=False, tile_rows=8)
    out2 = jax.block_until_ready(out2)
    ref2 = x2 + pe[:seq_len2][:, None, :]
    assert jnp.allclose(out2, ref2, atol=1e-6, rtol=1e-6), "tiled-grid mismatch"

    # ---- batch_first=True layout: (B, S, D) --------------------------------
    xb = jnp.transpose(x, (1, 0, 2))
    outb = positional_encoding_forward(xb, pe, p=p, training=False, batch_first=True)
    outb = jax.block_until_ready(outb)
    refb = xb + pe[:seq_len][None, :, :]
    assert jnp.allclose(outb, refb, atol=1e-6, rtol=1e-6), "batch_first mismatch"

    # ---- training mode (inverted dropout applied in-kernel) ----------------
    out_t = positional_encoding_forward(x, pe, jax.random.PRNGKey(1234),
                                        p=p, training=True, batch_first=False)
    out_t = jax.block_until_ready(out_t)
    assert out_t.shape == x.shape and out_t.dtype == x.dtype
    scaled = ref / (1.0 - p)
    ok = jnp.isclose(out_t, 0.0, atol=1e-6) | jnp.isclose(out_t, scaled,
                                                          rtol=1e-5, atol=1e-5)
    assert bool(ok.all()), "dropout output not in {0, ref/(1-p)}"

    print("KERNEL_OK")
</pallas_src>

<mosaic_0001>
module attributes {stable_mosaic.version = 11 : i64} {
  func.func @kernel(%arg0: i32, %arg1: memref<8x2x32xf32, #tpu.memory_space<vmem>>, %arg2: memref<8x32xf32, #tpu.memory_space<vmem>>, %arg3: memref<8x2x32xf32, #tpu.memory_space<vmem>>) attributes {dimension_semantics = [#tpu.dimension_semantics<parallel>], iteration_bounds = array<i64: 1>, scalar_prefetch = 0 : i64, scratch_operands = 0 : i64, tpu.core_type = #tpu.core_type<tc>, window_params = [{transform_indices = @transform_0, window_bounds = array<i64: 8, 2, 32>}, {transform_indices = @transform_1, window_bounds = array<i64: 8, 32>}, {transform_indices = @transform_2, window_bounds = array<i64: 8, 2, 32>}]} {
    %c0 = arith.constant 0 : index
    %c0_0 = arith.constant 0 : index
    %c0_1 = arith.constant 0 : index
    %0 = vector.load %arg1[%c0, %c0_0, %c0_1] : memref<8x2x32xf32, #tpu.memory_space<vmem>>, vector<8x2x32xf32>
    %c0_2 = arith.constant 0 : index
    %c0_3 = arith.constant 0 : index
    %1 = vector.load %arg2[%c0_2, %c0_3] : memref<8x32xf32, #tpu.memory_space<vmem>>, vector<8x32xf32>
    %2 = vector.shape_cast %1 : vector<8x32xf32> to vector<8x1x32xf32>
    %3 = vector.broadcast %2 : vector<8x1x32xf32> to vector<8x2x32xf32>
    %4 = arith.addf %0, %3 : vector<8x2x32xf32>
    %c0_4 = arith.constant 0 : index
    %c0_5 = arith.constant 0 : index
    %c0_6 = arith.constant 0 : index
    %5 = vector.load %arg3[%c0_4, %c0_5, %c0_6] : memref<8x2x32xf32, #tpu.memory_space<vmem>>, vector<8x2x32xf32>
    tpu.vector_store %arg3[%c0_4, %c0_5, %c0_6], %4 {strides = array<i32>} : memref<8x2x32xf32, #tpu.memory_space<vmem>>, vector<8x2x32xf32>,
    return
  }
  func.func @transform_0(%arg0: i32) -> (i32, i32, i32) {
    %c0_i32 = arith.constant 0 : i32
    %c0_i32_0 = arith.constant 0 : i32
    %c0_i32_1 = arith.constant 0 : i32
    return %arg0, %c0_i32, %c0_i32_0 : i32, i32, i32
  }
  func.func @transform_1(%arg0: i32) -> (i32, i32) {
    %c0_i32 = arith.constant 0 : i32
    %c0_i32_0 = arith.constant 0 : i32
    return %arg0, %c0_i32 : i32, i32
  }
  func.func @transform_2(%arg0: i32) -> (i32, i32, i32) {
    %c0_i32 = arith.constant 0 : i32
    %c0_i32_0 = arith.constant 0 : i32
    %c0_i32_1 = arith.constant 0 : i32
    return %arg0, %c0_i32, %c0_i32_0 : i32, i32, i32
  }
}

</mosaic_0001>

<bundles_post_ra>
// kernel: positional_encoding_forward.1
= control target key start
LH: loop header
LB: loop body
LE: loop exit
PB: predicated region body
PF: predicated region fallthrough
CT: control target
= control target key end

     0   :  { %v26_v1 = vlaneseq  ;;  %v172_v2 = vmov 1966171168   ;;  %s238_s0 = inlined_call_operand.vmem [shape: f32[8,2,32], index: 0, kind: input, shape index: {}]   ;;  %s239_s1 = inlined_call_operand.vmem [shape: f32[8,32], index: 1, kind: input, shape index: {}]   ;;  %s240_s2 = inlined_call_operand.hbm [shape: f32[8,2,32], index: 2, kind: output, shape index: {}]  }
   0x1   :  { %v20_v0 = vld [vmem:[%s239_s1] sm:$0xff]  ;;  %v24_v3 = vunpack.c.l.s4 %v172_v2 }
   0x2   :  { %v27_v4 = vshrl.u32 %v26_v1, 7  ;;  %v22_v6 = vcombine.high %v20_v0, %v20_v0 }
   0x3   :  { %v25_v5 = vunpack.c.0.s8 %v24_v3 }
   0x4   :  { %7 = vsyncpa [#allocation3], 0  ;;  %v73_v9 = vsub.s32 0, %v27_v4  ;;  %v12_v15 = vld [vmem:[%s238_s0] sm:$0x3]  ;;  %vm119_vm0 = vcmask 254976  }
   0x5   :  { %v28_v7 = vsub.s32 %v25_v5, %v27_v4  ;;  %v16_v19 = vld [vmem:[%s238_s0 + $0x8] sm:$0x3]  ;;  %v13_v21 = vld [vmem:[%s238_s0 + $0x2] sm:$0x3]  ;;  %v14_v22 = vld [vmem:[%s238_s0 + $0x4] sm:$0x3] }
   0x6   :  { %v17_v29 = vld [vmem:[%s238_s0 + $0xa] sm:$0x3]  ;;  %v18_v30 = vld [vmem:[%s238_s0 + $0xc] sm:$0x3]  ;;  %v15_v31 = vld [vmem:[%s238_s0 + $0x6] sm:$0x3] }
   0x7   :  { %v29_v8 = vrot.slane %v20_v0, %v28_v7  ;;  %v36_v10 = vrot.slane %v22_v6, %v28_v7  ;;  %v19_v39 = vld [vmem:[%s238_s0 + $0xe] sm:$0x3]  ;;  %s173_s26 = smov [#allocation2]  }
   0x8   :  { %s133_s27 = sshll.u32 %s173_s26, 4  ;;  %s134_s27 = int_to_ptr.vmem [resolvable:$true] %s133_s27 }
   0x9   :  { %v45_v11 = vrot.slane %v29_v8, %v28_v7  ;;  %v37_v12 = vcombine.high %v29_v8, %v29_v8  ;;  %v52_v13 = vrot.slane %v36_v10, %v28_v7  ;;  %v38_v14 = vcombine.high %v36_v10, %v36_v10  ;;  %s148_s0 = scalar_lea.vmem %s134_s27, 256  ;;  %p153_p1 = scmp.lt.s32.totalorder %s134_s27, %s134_s27 }
   0xa   :  { %p149_p0 = scmp.ne.s32.totalorder %s134_s27, %s148_s0  ;;  %p154_p2 = scmp.lt.s32.totalorder %s148_s0, %s148_s0 }
   0xb   :  { %v74_v16 = vrot.slane %v45_v11, %v73_v9  ;;  %v59_v17 = vrot.slane %v37_v12, %v28_v7  ;;  %v67_v18 = vcombine.high %v45_v11, %v45_v11  ;;  %v90_v20 = vrot.slane %v52_v13, %v73_v9 }
   0xc   :  { %v66_v23 = vrot.slane %v38_v14, %v28_v7  ;;  %v68_v24 = vcombine.high %v52_v13, %v52_v13  ;;  %p155_p3 = por %p154_p2, %p153_p1 }
   0xd   :  { %v111_v25 = vadd.f32 %v74_v16, %v12_v15  ;;  %v78_v26 = vrot.slane %v59_v17, %v73_v9  ;;  %v82_v27 = vrot.slane %v67_v18, %v73_v9  ;;  %v69_v28 = vcombine.high %v59_v17, %v59_v17 }
   0xe   :  { %v115_v32 = vadd.f32 %v90_v20, %v16_v19  ;;  %v94_v33 = vrot.slane %v66_v23, %v73_v9  ;;  %v98_v34 = vrot.slane %v68_v24, %v73_v9  ;;  %v70_v35 = vcombine.high %v66_v23, %v66_v23  ;;  %p156_p4 = pnand %p155_p3, %p149_p0 }
   0xf   :  { %120 = vst.msk [vmem:[#allocation2] sm:$0x3] %vm119_vm0, %v111_v25  ;;  %v112_v36 = vadd.f32 %v78_v26, %v13_v21  ;;  %v113_v37 = vadd.f32 %v82_v27, %v14_v22  ;;  %v86_v38 = vrot.slane %v69_v28, %v73_v9 }
  0x10   :  { %124 = vst.msk [vmem:[#allocation2 + $0x8] sm:$0x3] %vm119_vm0, %v115_v32  ;;  %v116_v40 = vadd.f32 %v94_v33, %v17_v29  ;;  %v117_v41 = vadd.f32 %v98_v34, %v18_v30  ;;  %v102_v42 = vrot.slane %v70_v35, %v73_v9 }
  0x11   :  { %121 = vst.msk [vmem:[#allocation2 + $0x2] sm:$0x3] %vm119_vm0, %v112_v36  ;;  %122 = vst.msk [vmem:[#allocation2 + $0x4] sm:$0x3] %vm119_vm0, %v113_v37  ;;  %v114_v43 = vadd.f32 %v86_v38, %v15_v31 }
  0x12   :  { %125 = vst.msk [vmem:[#allocation2 + $0xa] sm:$0x3] %vm119_vm0, %v116_v40  ;;  %126 = vst.msk [vmem:[#allocation2 + $0xc] sm:$0x3] %vm119_vm0, %v117_v41  ;;  %v118_v44 = vadd.f32 %v102_v42, %v19_v39 }
  0x13   :  { %123 = vst.msk [vmem:[#allocation2 + $0x6] sm:$0x3] %vm119_vm0, %v114_v43 }
  0x14   :  { %127 = vst.msk [vmem:[#allocation2 + $0xe] sm:$0x3] %vm119_vm0, %v118_v44 }
  0x15   :  { %159 = shalt.err (!%p156_p4)
}
  0x16   :  { %s160_s30 = scalar_lea.hbm %s240_s2, 256 }
  0x17   :  { %p161_p5 = scmp.ne.s32.totalorder %s240_s2, %s160_s30  ;;  %p164_p6 = scmp.lt.u32.totalorder %s160_s30, %s240_s2 }
  0x19   :  { %p166_p7 = pnand %p164_p6, %p161_p5 }
  0x1b   :  { %169 = shalt.err (!%p166_p7)
}
  0x1c   :  { %s174_s7 = smov 32   ;;  %s175_s8 = smov 2  }
  0x1d   :  { %139 = dma.vmem_to_hbm [thread:$0]  %s134_s27, 256, %s240_s2, [#allocation3], %s174_s7, %s174_s7, %s175_s8  }
  0x1e   :  { %170 = dma.done.wait [#allocation3], 256  }
  0x1f   :  { %171 = vsyncadd [#allocation3], 4294967040 }
  0x20   :  { %143 = vsyncpa [#allocation3], 1 }

</bundles_post_ra>
